<compile_context>
chip_gen: v7x
topology: tpu7x:2x2x1
jax: 0.10.0
libtpu: 0.0.40
codegen_flags: <defaults>
</compile_context>

<pallas_src>
import functools

import jax
import jax.numpy as jnp
from jax.experimental import pallas as pl
from jax.experimental.pallas import tpu as pltpu


def _lm_head_kernel(x_ref, w_ref, b_ref, out_ref):
    """One (v, i) grid step: out[i, v] = x[i, :] @ w[:, v] + b[v]."""
    out_ref[...] = (
        jnp.dot(x_ref[...], w_ref[...], preferred_element_type=jnp.float32)
        + b_ref[...]
    ).astype(out_ref.dtype)


@functools.partial(jax.jit, static_argnames=("tm", "tn"))
def lm_head_logits(x, w, b, *, tm=128, tn=2048):
    """x: [M, H], w: [H, V], b: [V] -> logits [M, V] f32.

    bf16 operands on the MXU, f32 accumulation.  Grid = (vocab tiles, row
    tiles) with the vocab axis outermost so W is streamed from HBM once.
    """
    M, H = x.shape
    V = w.shape[1]
    tn = min(tn, pl.cdiv(V, 128) * 128)     # don't over-tile tiny vocabs
    M_pad = pl.cdiv(M, tm) * tm
    V_pad = pl.cdiv(V, tn) * tn

    xb = jnp.pad(x.astype(jnp.bfloat16), ((0, M_pad - M), (0, 0)))
    wb = jnp.pad(w.astype(jnp.bfloat16), ((0, 0), (0, V_pad - V)))
    b2 = jnp.pad(b.astype(jnp.float32), (0, V_pad - V)).reshape(1, V_pad)

    grid = (V_pad // tn, M_pad // tm)       # vocab outermost -> single W pass
    out = pl.pallas_call(
        _lm_head_kernel,
        out_shape=jax.ShapeDtypeStruct((M_pad, V_pad), jnp.float32),
        grid_spec=pltpu.PrefetchScalarGridSpec(
            num_scalar_prefetch=0,
            grid=grid,
            in_specs=[
                pl.BlockSpec((tm, H), lambda v, i: (i, 0)),   # x row tile
                pl.BlockSpec((H, tn), lambda v, i: (0, v)),   # w vocab tile
                pl.BlockSpec((1, tn), lambda v, i: (0, v)),   # bias tile
            ],
            out_specs=pl.BlockSpec((tm, tn), lambda v, i: (i, v)),
        ),
        compiler_params=pltpu.CompilerParams(
            dimension_semantics=("parallel", "parallel"),
            vmem_limit_bytes=48 * 1024 * 1024,   # fits v7x (64 MiB) & v5e/v6e
        ),
    )(xb, wb, b2)
    return out[:M, :V]


def bigbird_seq4opt_forward(hidden_states, w_head, b_head, position_input,
                            options_input, options_mask, answers_mask,
                            labels=None, *, tn=2048):
    """JAX port of BigBirdForSeq_4opt.forward (post-encoder math)."""
    B, S, H = hidden_states.shape
    O = position_input.shape[1]              # CFG.max_option_num
    C, L = options_input.shape[2], options_input.shape[3]
    V = w_head.shape[1]

    # gather(lm_head(hidden), 1, pos) == lm_head(gather(hidden, 1, pos)):
    # project only the O option positions per example through the vocab head.
    gathered = jnp.take_along_axis(
        hidden_states, position_input[:, :, None].astype(jnp.int32), axis=1
    )                                         # [B, O, H]
    logits = lm_head_logits(
        gathered.reshape(B * O, H), w_head, b_head, tn=tn
    ).reshape(B, O, V)

    # out = gather(expand(logits), 3, options_input); masked mean over tokens
    logits_e = jnp.broadcast_to(logits[:, :, None, :], (B, O, C, V))
    out = jnp.take_along_axis(logits_e, options_input.astype(jnp.int32), axis=3)
    out = out * options_mask
    out = out.sum(-1) / options_mask.sum(-1)  # [B, O, C]
    out = out.reshape(-1, C)                  # [B*O, 4]

    loss = None
    total_acc = None
    if labels is not None:
        labels_flat = labels.reshape(-1)
        logp = jax.nn.log_softmax(out, axis=-1)
        nll = -jnp.take_along_axis(logp, labels_flat[:, None], axis=-1)[:, 0]
        loss = (nll.reshape(B, O) * answers_mask).sum() / answers_mask.sum()
        acc = (jnp.argmax(out, -1) == labels_flat).astype(jnp.float32)
        total_acc = (acc.reshape(B, O) * answers_mask).sum()
    return loss, out, total_acc


def _ref_forward(hidden_states, w_head, b_head, position_input, options_input,
                 options_mask, answers_mask, labels):
    """Pure-JAX reference that follows the torch code path literally
    (full [B, S, V] logits, same bf16-input / f32-accumulate matmul math)."""
    B, S, H = hidden_states.shape
    V = w_head.shape[1]
    O = position_input.shape[1]
    C = options_input.shape[2]

    bigbird_output = jnp.einsum(
        "bsh,hv->bsv",
        hidden_states.astype(jnp.bfloat16),
        w_head.astype(jnp.bfloat16),
        preferred_element_type=jnp.float32,
    ) + b_head                                            # [B, S, V]

    pos = jnp.broadcast_to(position_input[:, :, None], (B, O, V))
    out = jnp.take_along_axis(bigbird_output, pos, axis=1)       # [B, O, V]
    out = jnp.broadcast_to(out[:, :, None, :], (B, O, C, V))
    out = jnp.take_along_axis(out, options_input, axis=3)        # [B, O, C, L]
    out = out * options_mask
    out = out.sum(-1) / options_mask.sum(-1)
    out = out.reshape(-1, C)

    labels_flat = labels.reshape(-1)
    logp = jax.nn.log_softmax(out, axis=-1)
    nll = -jnp.take_along_axis(logp, labels_flat[:, None], axis=-1)[:, 0]
    loss = (nll.reshape(B, O) * answers_mask).sum() / answers_mask.sum()
    acc = (jnp.argmax(out, -1) == labels_flat).astype(jnp.float32)
    total_acc = (acc.reshape(B, O) * answers_mask).sum()
    return loss, out, total_acc


if __name__ == "__main__":
    # Small TPU-tile-friendly stand-ins for BigBird shapes
    # (real: H=768, V=50358 -> pad V to 50432, tn~2048).
    B, S, H, V = 2, 16, 256, 512
    O, C, L = 4, 4, 3          # max_option_num, 4 choices, option token length

    key = jax.random.PRNGKey(0)
    k_h, k_w, k_b, k_p, k_o, k_m, k_l, k_a = jax.random.split(key, 8)

    hidden_states = jax.random.normal(k_h, (B, S, H), dtype=jnp.float32)
    w_head = jax.random.normal(k_w, (H, V), dtype=jnp.float32) * (1.0 / H ** 0.5)
    b_head = jax.random.normal(k_b, (V,), dtype=jnp.float32) * 0.02

    position_input = jax.random.randint(k_p, (B, O), 0, S, dtype=jnp.int32)
    options_input = jax.random.randint(k_o, (B, O, C, L), 0, V, dtype=jnp.int32)
    options_mask = (jax.random.uniform(k_m, (B, O, C, L)) > 0.3).astype(jnp.float32)
    options_mask = options_mask.at[..., 0].set(1.0)   # no empty option rows
    labels = jax.random.randint(k_l, (B, O), 0, C, dtype=jnp.int32)
    answers_mask = (jax.random.uniform(k_a, (B, O)) > 0.25).astype(jnp.float32)
    answers_mask = answers_mask.at[:, 0].set(1.0)     # no empty answer mask

    loss, out, total_acc = bigbird_seq4opt_forward(
        hidden_states, w_head, b_head, position_input, options_input,
        options_mask, answers_mask, labels, tn=256)
    loss = jax.block_until_ready(loss)
    out = jax.block_until_ready(out)
    total_acc = jax.block_until_ready(total_acc)

    ref_loss, ref_out, ref_acc = _ref_forward(
        hidden_states, w_head, b_head, position_input, options_input,
        options_mask, answers_mask, labels)

    assert out.shape == (B * O, C)
    assert jnp.allclose(out, ref_out, atol=1e-3, rtol=1e-3), "scores mismatch"
    assert jnp.allclose(loss, ref_loss, atol=1e-3, rtol=1e-3), "loss mismatch"
    assert jnp.allclose(total_acc, ref_acc, atol=1e-5), "accuracy mismatch"

    print("KERNEL_OK")
</pallas_src>

<mosaic_0001>
module attributes {stable_mosaic.version = 11 : i64} {
  func.func @_lm_head_kernel(%arg0: i32, %arg1: i32, %arg2: memref<128x256xbf16, #tpu.memory_space<vmem>>, %arg3: memref<256x256xbf16, #tpu.memory_space<vmem>>, %arg4: memref<1x256xf32, #tpu.memory_space<vmem>>, %arg5: memref<128x256xf32, #tpu.memory_space<vmem>>) attributes {dimension_semantics = [#tpu.dimension_semantics<parallel>, #tpu.dimension_semantics<parallel>], iteration_bounds = array<i64: 2, 1>, scalar_prefetch = 0 : i64, scratch_operands = 0 : i64, tpu.core_type = #tpu.core_type<tc>, window_params = [{transform_indices = @transform_0, window_bounds = array<i64: 128, 256>}, {transform_indices = @transform_1, window_bounds = array<i64: 256, 256>}, {transform_indices = @transform_2, window_bounds = array<i64: 1, 256>}, {transform_indices = @transform_3, window_bounds = array<i64: 128, 256>}]} {
    %c0 = arith.constant 0 : index
    %c0_0 = arith.constant 0 : index
    %0 = vector.load %arg2[%c0, %c0_0] : memref<128x256xbf16, #tpu.memory_space<vmem>>, vector<128x256xbf16>
    %c0_1 = arith.constant 0 : index
    %c0_2 = arith.constant 0 : index
    %1 = vector.load %arg3[%c0_1, %c0_2] : memref<256x256xbf16, #tpu.memory_space<vmem>>, vector<256x256xbf16>
    %cst = arith.constant dense<0.000000e+00> : vector<128x256xf32>
    %2 = tpu.matmul %0, %1, %cst {dimension_numbers = #tpu.dot_dimension_numbers<[1], [0], [0], [1], [0, 0, 1, 1], [], []>} : vector<128x256xbf16>, vector<256x256xbf16>, vector<128x256xf32> -> vector<128x256xf32>
    %c0_3 = arith.constant 0 : index
    %c0_4 = arith.constant 0 : index
    %3 = vector.load %arg4[%c0_3, %c0_4] : memref<1x256xf32, #tpu.memory_space<vmem>>, vector<1x256xf32>
    %4 = vector.broadcast %3 : vector<1x256xf32> to vector<128x256xf32>
    %5 = arith.addf %2, %4 : vector<128x256xf32>
    %c0_5 = arith.constant 0 : index
    %c0_6 = arith.constant 0 : index
    %6 = vector.load %arg5[%c0_5, %c0_6] : memref<128x256xf32, #tpu.memory_space<vmem>>, vector<128x256xf32>
    tpu.vector_store %arg5[%c0_5, %c0_6], %5 {strides = array<i32>} : memref<128x256xf32, #tpu.memory_space<vmem>>, vector<128x256xf32>,
    return
  }
  func.func @transform_0(%arg0: i32, %arg1: i32) -> (i32, i32) {
    %c0_i32 = arith.constant 0 : i32
    %c0_i32_0 = arith.constant 0 : i32
    return %arg1, %c0_i32 : i32, i32
  }
  func.func @transform_1(%arg0: i32, %arg1: i32) -> (i32, i32) {
    %c0_i32 = arith.constant 0 : i32
    %c0_i32_0 = arith.constant 0 : i32
    return %c0_i32, %arg0 : i32, i32
  }
  func.func @transform_2(%arg0: i32, %arg1: i32) -> (i32, i32) {
    %c0_i32 = arith.constant 0 : i32
    %c0_i32_0 = arith.constant 0 : i32
    return %c0_i32, %arg0 : i32, i32
  }
  func.func @transform_3(%arg0: i32, %arg1: i32) -> (i32, i32) {
    %c0_i32 = arith.constant 0 : i32
    return %arg1, %arg0 : i32, i32
  }
}

</mosaic_0001>

<bundles_post_ra>
// kernel: lm_head_logits.1
= control target key start
LH: loop header
LB: loop body
LE: loop exit
PB: predicated region body
PF: predicated region fallthrough
CT: control target
= control target key end

     0   :  { %s1285_s12 = smov 0   ;;  %s1287_s13 = smov 0   ;;  %s1651_s0 = inlined_call_operand.vmem [shape: bf16[128,256], index: 0, kind: input, shape index: {}]   ;;  %s1652_s1 = inlined_call_operand.vmem [shape: bf16[256,512], index: 1, kind: input, shape index: {}]   ;;  %s1653_s2 = inlined_call_operand.vmem [shape: f32[1,512], index: 2, kind: input, shape index: {}]   ;;  %s1654_s3 = inlined_call_operand.vmem [shape: f32[128,512], index: 3, kind: output, shape index: {}]  }
   0x1   :  { %s1289_s14 = smov 0   ;;  %s1291_s15 = smov 0  }
   0x2   :  { %s1293_s16 = smov 0  }
   0x3 LB: > { %s25_s17 = sadd.s32 1, %s1259_s15  ;;  %s1014_s18 = sadd.s32 4294967295, %s1263_s16   ;;  %s1263_s16 = sphi %s1293_s16, %s13_s16   ;;  %s1259_s15 = sphi %s1291_s15, %s1659_s15   ;;  %s1255_s14 = sphi %s1289_s14, %s1658_s14   ;;  %s1251_s13 = sphi %s1287_s13, %s1657_s13   ;;  %s1247_s12 = sphi %s1285_s12, %s1656_s12  }
   0x4   : > { %p27_p0 = scmp.ge.s32.totalorder %s25_s17, 2  ;;  %p65_p1 = scmp.ne.s32.totalorder %s1251_s13, %s1247_s12 }
   0x5   : > { %p66_p2 = scmp.eq.s32.totalorder %s1263_s16, 0  ;;  %p123_p4 = scmp.eq.s32.totalorder %s1014_s18, 1 }
   0x6   : > { %s1661_s17 = smov (%p27_p0, %s25_s17), 0  ;;  %s58_s20 = sadd.s32 1, %s1251_s13 }
   0x7   : > { %p67_p3 = por %p66_p2, %p65_p1  ;;  %s55_s19 = ssub.s32 %s1259_s15, %s1661_s17 }
   0x8   : > { %p56_p5 = scmp.eq.s32.totalorder %s55_s19, 0  ;;  %p1320_p6 = por %p123_p4, %p65_p1 }
   0x9   : > { %p1018_p7 = scmp.ge.s32.totalorder %s1263_s16, 2 }
   0xa   : > { %s1325_s22 = scalar_select %p56_p5, %s1251_s13, %s58_s20  }
   0xb   : > { %155 = sbr.rel (%p1018_p7) target bundleno = 38 (0x26), region = 20 }
  0x12   : > { %158 = sbr.rel (!%p67_p3) target bundleno = 38 (0x26), region = 24  ;;  %s160_s23 = sand.u32 (%p67_p3), 1, %s1251_s13  }
  0x13   : > { %s1079_s24 = sshll.u32 (%p67_p3), %s1259_s15, 3  ;;  %s1019_s25 = sshll.u32 (%p67_p3), %s160_s23, 8 }
  0x14   : > { %s1333_s28 = scalar_lea.vmem (%p67_p3), %s1652_s1, %s1079_s24  ;;  %s1338_s29 = scalar_lea.vmem (%p67_p3), [#allocation2], %s1019_s25 }
  0x15   : > { %v255_v0 = vld [vmem:[%s1333_s28] sm:$0xff] (%p67_p3)  ;;  %v257_v1 = vld [vmem:[%s1333_s28 + $0x10] sm:$0xff] (%p67_p3) }
  0x16   : > { %v259_v2 = vld [vmem:[%s1333_s28 + $0x20] sm:$0xff] (%p67_p3)  ;;  %256 = vst [vmem:[%s1338_s29] sm:$0xff] (%p67_p3), %v255_v0  ;;  %258 = vst [vmem:[%s1338_s29 + $0x8] sm:$0xff] (%p67_p3), %v257_v1  ;;  %v261_v3 = vld [vmem:[%s1333_s28 + $0x30] sm:$0xff] (%p67_p3) }
  0x17   : > { %260 = vst [vmem:[%s1338_s29 + $0x10] sm:$0xff] (%p67_p3), %v259_v2  ;;  %v263_v4 = vld [vmem:[%s1333_s28 + $0x40] sm:$0xff] (%p67_p3)  ;;  %v265_v5 = vld [vmem:[%s1333_s28 + $0x50] sm:$0xff] (%p67_p3)  ;;  %262 = vst [vmem:[%s1338_s29 + $0x18] sm:$0xff] (%p67_p3), %v261_v3 }
  0x18   : > { %264 = vst [vmem:[%s1338_s29 + $0x20] sm:$0xff] (%p67_p3), %v263_v4  ;;  %266 = vst [vmem:[%s1338_s29 + $0x28] sm:$0xff] (%p67_p3), %v265_v5  ;;  %v267_v6 = vld [vmem:[%s1333_s28 + $0x60] sm:$0xff] (%p67_p3)  ;;  %v269_v7 = vld [vmem:[%s1333_s28 + $0x70] sm:$0xff] (%p67_p3) }
  0x19   : > { %v271_v8 = vld [vmem:[%s1333_s28 + $0x80] sm:$0xff]  ;;  %268 = vst [vmem:[%s1338_s29 + $0x30] sm:$0xff] %v267_v6  ;;  %270 = vst [vmem:[%s1338_s29 + $0x38] sm:$0xff] %v269_v7  ;;  %v273_v9 = vld [vmem:[%s1333_s28 + $0x90] sm:$0xff] }
  0x1a   : > { %272 = vst [vmem:[%s1338_s29 + $0x40] sm:$0xff] %v271_v8  ;;  %v275_v10 = vld [vmem:[%s1333_s28 + $0xa0] sm:$0xff]  ;;  %v277_v11 = vld [vmem:[%s1333_s28 + $0xb0] sm:$0xff]  ;;  %274 = vst [vmem:[%s1338_s29 + $0x48] sm:$0xff] %v273_v9 }
  0x1b   : > { %276 = vst [vmem:[%s1338_s29 + $0x50] sm:$0xff] %v275_v10  ;;  %278 = vst [vmem:[%s1338_s29 + $0x58] sm:$0xff] %v277_v11  ;;  %v279_v12 = vld [vmem:[%s1333_s28 + $0xc0] sm:$0xff]  ;;  %v281_v13 = vld [vmem:[%s1333_s28 + $0xd0] sm:$0xff] }
  0x1c   : > { %v283_v14 = vld [vmem:[%s1333_s28 + $0xe0] sm:$0xff]  ;;  %280 = vst [vmem:[%s1338_s29 + $0x60] sm:$0xff] %v279_v12  ;;  %282 = vst [vmem:[%s1338_s29 + $0x68] sm:$0xff] %v281_v13  ;;  %v285_v15 = vld [vmem:[%s1333_s28 + $0xf0] sm:$0xff] }
  0x1d   : > { %284 = vst [vmem:[%s1338_s29 + $0x70] sm:$0xff] %v283_v14  ;;  %v287_v16 = vld [vmem:[%s1333_s28 + $0x100] sm:$0xff]  ;;  %v289_v17 = vld [vmem:[%s1333_s28 + $0x110] sm:$0xff]  ;;  %286 = vst [vmem:[%s1338_s29 + $0x78] sm:$0xff] %v285_v15 }
  0x1e   : > { %288 = vst [vmem:[%s1338_s29 + $0x80] sm:$0xff] %v287_v16  ;;  %290 = vst [vmem:[%s1338_s29 + $0x88] sm:$0xff] %v289_v17  ;;  %v291_v18 = vld [vmem:[%s1333_s28 + $0x120] sm:$0xff]  ;;  %v293_v19 = vld [vmem:[%s1333_s28 + $0x130] sm:$0xff] }
  0x1f   : > { %v295_v20 = vld [vmem:[%s1333_s28 + $0x140] sm:$0xff]  ;;  %292 = vst [vmem:[%s1338_s29 + $0x90] sm:$0xff] %v291_v18  ;;  %294 = vst [vmem:[%s1338_s29 + $0x98] sm:$0xff] %v293_v19  ;;  %v297_v21 = vld [vmem:[%s1333_s28 + $0x150] sm:$0xff] }
  0x20   : > { %296 = vst [vmem:[%s1338_s29 + $0xa0] sm:$0xff] %v295_v20  ;;  %v299_v22 = vld [vmem:[%s1333_s28 + $0x160] sm:$0xff]  ;;  %v301_v23 = vld [vmem:[%s1333_s28 + $0x170] sm:$0xff]  ;;  %298 = vst [vmem:[%s1338_s29 + $0xa8] sm:$0xff] %v297_v21 }
  0x21   : > { %300 = vst [vmem:[%s1338_s29 + $0xb0] sm:$0xff] %v299_v22  ;;  %302 = vst [vmem:[%s1338_s29 + $0xb8] sm:$0xff] %v301_v23  ;;  %v303_v24 = vld [vmem:[%s1333_s28 + $0x180] sm:$0xff]  ;;  %v305_v25 = vld [vmem:[%s1333_s28 + $0x190] sm:$0xff] }
  0x22   : > { %v307_v26 = vld [vmem:[%s1333_s28 + $0x1a0] sm:$0xff]  ;;  %304 = vst [vmem:[%s1338_s29 + $0xc0] sm:$0xff] %v303_v24  ;;  %306 = vst [vmem:[%s1338_s29 + $0xc8] sm:$0xff] %v305_v25  ;;  %v309_v27 = vld [vmem:[%s1333_s28 + $0x1b0] sm:$0xff] }
  0x23   : > { %308 = vst [vmem:[%s1338_s29 + $0xd0] sm:$0xff] %v307_v26  ;;  %v311_v28 = vld [vmem:[%s1333_s28 + $0x1c0] sm:$0xff]  ;;  %v313_v29 = vld [vmem:[%s1333_s28 + $0x1d0] sm:$0xff]  ;;  %310 = vst [vmem:[%s1338_s29 + $0xd8] sm:$0xff] %v309_v27 }
  0x24   : > { %312 = vst [vmem:[%s1338_s29 + $0xe0] sm:$0xff] %v311_v28  ;;  %314 = vst [vmem:[%s1338_s29 + $0xe8] sm:$0xff] %v313_v29  ;;  %v315_v30 = vld [vmem:[%s1333_s28 + $0x1e0] sm:$0xff]  ;;  %v317_v31 = vld [vmem:[%s1333_s28 + $0x1f0] sm:$0xff] }
  0x25   : > { %316 = vst [vmem:[%s1338_s29 + $0xf0] sm:$0xff] %v315_v30  ;;  %318 = vst [vmem:[%s1338_s29 + $0xf8] sm:$0xff] %v317_v31 }
  0x26 PF: > { %p1022_p8 = scmp.ge.s32.totalorder %s1263_s16, 1  ;;  %p331_p9 = scmp.lt.s32.totalorder %s1263_s16, 3 }
  0x28   : > { %p332_p10 = pnand %p1022_p8, %p331_p9 }
  0x29   : > { %s338_s30 = sand.u32 (!%p332_p10), 1, %s1247_s12   ;;  %v1203_v32 = vld [vmem:[%s1651_s0 + $0x4] ss:$8 sps:$4 sm:$0xff] (!%p332_p10)   ;;  %v1201_v2 = vld [vmem:[%s1651_s0] ss:$8 sps:$4 sm:$0xff] (!%p332_p10)   ;;  %s1025_s26 = sshll.u32 (!%p332_p10), %s1255_s14, 1  ;;  %v435_v16 = vlaneseq (!%p332_p10) }
  0x2a   : > { %335 = sbr.rel (%p332_p10) target bundleno = 360 (0x168), region = 66  ;;  %s1404_s4 = sshll.u32 (!%p332_p10), %s338_s30, 8  ;;  %v1206_v33 = vld [vmem:[%s1651_s0 + $0x44] ss:$8 sps:$4 sm:$0xff] (!%p332_p10)   ;;  %717 = vmatprep.mubr.bf16.mxu0 (!%p332_p10), %v1203_v32  ;;  %v1204_v3 = vld [vmem:[%s1651_s0 + $0x40] ss:$8 sps:$4 sm:$0xff] (!%p332_p10)  }
  0x2b   : > { %s1413_s9 = scalar_lea.vmem (!%p332_p10), [#allocation2], %s1404_s4  ;;  %757 = vmatprep.mubr.bf16.mxu1 (!%p332_p10), %v1206_v33  ;;  %v1207_v4 = vld [vmem:[%s1651_s0 + $0x14] ss:$8 sps:$4 sm:$0xff] (!%p332_p10)   ;;  %v1211_v6 = vld [vmem:[%s1651_s0 + $0x10] ss:$8 sps:$4 sm:$0xff] (!%p332_p10)   ;;  %p379_p11 = scmp.lt.s32.totalorder (!%p332_p10), %s1025_s26, 3 }
  0x2c   : > { %v1153_v34 = vld [vmem:[%s1413_s9 + $0x4] ss:$8 sps:$4 sm:$0xff] (!%p332_p10)   ;;  %v1155_v35 = vld [vmem:[%s1413_s9] ss:$8 sps:$4 sm:$0xff] (!%p332_p10)   ;;  %v1156_v36 = vld [vmem:[%s1413_s9 + $0x14] ss:$8 sps:$4 sm:$0xff] (!%p332_p10)  }
  0x2d   : > { %685 = vmatprep.subr.bf16.mxu0 (!%p332_p10), %v1153_v34  ;;  %1081 = vmatprep.subr.bf16.mxu1 (!%p332_p10), %v1153_v34  ;;  %v1158_v37 = vld [vmem:[%s1413_s9 + $0x10] ss:$8 sps:$4 sm:$0xff] (!%p332_p10)   ;;  %v1159_v38 = vld [vmem:[%s1413_s9 + $0x24] ss:$8 sps:$4 sm:$0xff] (!%p332_p10)   ;;  %v1161_v39 = vld [vmem:[%s1413_s9 + $0x20] ss:$8 sps:$4 sm:$0xff] (!%p332_p10)  }
  0x2e   : > { %686 = vmatpush1.bf16.msra.mxu0 (!%p332_p10), %v1155_v35  ;;  %1097 = vmatpush1.bf16.msra.mxu1 (!%p332_p10), %v1155_v35  ;;  %v1162_v40 = vld [vmem:[%s1413_s9 + $0x34] ss:$8 sps:$4 sm:$0xff] (!%p332_p10)   ;;  %v1164_v41 = vld [vmem:[%s1413_s9 + $0x30] ss:$8 sps:$4 sm:$0xff] (!%p332_p10)   ;;  %v1165_v42 = vld [vmem:[%s1413_s9 + $0x44] ss:$8 sps:$4 sm:$0xff] (!%p332_p10)  }
  0x2f   : > { %687 = vmatprep.subr.bf16.mxu0 (!%p332_p10), %v1156_v36  ;;  %1082 = vmatprep.subr.bf16.mxu1 (!%p332_p10), %v1156_v36  ;;  %v1167_v43 = vld [vmem:[%s1413_s9 + $0x40] ss:$8 sps:$4 sm:$0xff] (!%p332_p10)   ;;  %v1168_v44 = vld [vmem:[%s1413_s9 + $0x54] ss:$8 sps:$4 sm:$0xff] (!%p332_p10)   ;;  %v1170_v45 = vld [vmem:[%s1413_s9 + $0x50] ss:$8 sps:$4 sm:$0xff] (!%p332_p10)  }
  0x30   : > { %v1171_v46 = vld [vmem:[%s1413_s9 + $0x64] ss:$8 sps:$4 sm:$0xff] (!%p332_p10)   ;;  %v1173_v47 = vld [vmem:[%s1413_s9 + $0x60] ss:$8 sps:$4 sm:$0xff] (!%p332_p10)   ;;  %v1174_v48 = vld [vmem:[%s1413_s9 + $0x74] ss:$8 sps:$4 sm:$0xff] (!%p332_p10)  }
  0x31   : > { %v1176_v49 = vld [vmem:[%s1413_s9 + $0x70] ss:$8 sps:$4 sm:$0xff]   ;;  %v1177_v50 = vld [vmem:[%s1413_s9 + $0x84] ss:$8 sps:$4 sm:$0xff]   ;;  %v1179_v51 = vld [vmem:[%s1413_s9 + $0x80] ss:$8 sps:$4 sm:$0xff]  }
  0x32   : > { %688 = vmatpush1.bf16.msra.mxu0 %v1158_v37  ;;  %1098 = vmatpush1.bf16.msra.mxu1 %v1158_v37  ;;  %v1180_v52 = vld [vmem:[%s1413_s9 + $0x94] ss:$8 sps:$4 sm:$0xff]   ;;  %v1182_v53 = vld [vmem:[%s1413_s9 + $0x90] ss:$8 sps:$4 sm:$0xff]   ;;  %v1183_v54 = vld [vmem:[%s1413_s9 + $0xa4] ss:$8 sps:$4 sm:$0xff]  }
  0x33   : > { %689 = vmatprep.subr.bf16.mxu0 %v1159_v38  ;;  %1083 = vmatprep.subr.bf16.mxu1 %v1159_v38  ;;  %v1185_v55 = vld [vmem:[%s1413_s9 + $0xa0] ss:$8 sps:$4 sm:$0xff]   ;;  %v1186_v56 = vld [vmem:[%s1413_s9 + $0xb4] ss:$8 sps:$4 sm:$0xff]   ;;  %v1188_v57 = vld [vmem:[%s1413_s9 + $0xb0] ss:$8 sps:$4 sm:$0xff]  }
  0x34   : > { %v1189_v58 = vld [vmem:[%s1413_s9 + $0xc4] ss:$8 sps:$4 sm:$0xff]   ;;  %v1191_v59 = vld [vmem:[%s1413_s9 + $0xc0] ss:$8 sps:$4 sm:$0xff]   ;;  %v1192_v60 = vld [vmem:[%s1413_s9 + $0xd4] ss:$8 sps:$4 sm:$0xff]  }
  0x35   : > { %v1194_v61 = vld [vmem:[%s1413_s9 + $0xd0] ss:$8 sps:$4 sm:$0xff]   ;;  %v1195_v62 = vld [vmem:[%s1413_s9 + $0xe4] ss:$8 sps:$4 sm:$0xff]   ;;  %v1197_v63 = vld [vmem:[%s1413_s9 + $0xe0] ss:$8 sps:$4 sm:$0xff]  }
  0x36   : > { %690 = vmatpush1.bf16.msra.mxu0 %v1161_v39  ;;  %1099 = vmatpush1.bf16.msra.mxu1 %v1161_v39  ;;  %v1198_v0 = vld [vmem:[%s1413_s9 + $0xf4] ss:$8 sps:$4 sm:$0xff]   ;;  %v1200_v1 = vld [vmem:[%s1413_s9 + $0xf0] ss:$8 sps:$4 sm:$0xff]   ;;  %v1213_v8 = vld [vmem:[%s1651_s0 + $0x24] ss:$8 sps:$4 sm:$0xff]  }
  0x37   : > { %691 = vmatprep.subr.bf16.mxu0 %v1162_v40  ;;  %1084 = vmatprep.subr.bf16.mxu1 %v1162_v40  ;;  %v1209_v5 = vld [vmem:[%s1651_s0 + $0x54] ss:$8 sps:$4 sm:$0xff]   ;;  %v1212_v7 = vld [vmem:[%s1651_s0 + $0x50] ss:$8 sps:$4 sm:$0xff]   ;;  %v1215_v9 = vld [vmem:[%s1651_s0 + $0x64] ss:$8 sps:$4 sm:$0xff]  }
  0x38   : > { %v1217_v10 = vld [vmem:[%s1651_s0 + $0x20] ss:$8 sps:$4 sm:$0xff]   ;;  %v1219_v12 = vld [vmem:[%s1651_s0 + $0x34] ss:$8 sps:$4 sm:$0xff]   ;;  %v1223_v14 = vld [vmem:[%s1651_s0 + $0x30] ss:$8 sps:$4 sm:$0xff]  }
  0x39   : > { %v1218_v11 = vld [vmem:[%s1651_s0 + $0x60] ss:$8 sps:$4 sm:$0xff]   ;;  %v1221_v13 = vld [vmem:[%s1651_s0 + $0x74] ss:$8 sps:$4 sm:$0xff]   ;;  %v1224_v15 = vld [vmem:[%s1651_s0 + $0x70] ss:$8 sps:$4 sm:$0xff]  }
  0x3a   : > { %692 = vmatpush1.bf16.msra.mxu0 %v1164_v41  ;;  %1100 = vmatpush1.bf16.msra.mxu1 %v1164_v41  ;;  %s1663_s26 = smov (!%p379_p11, %s1025_s26), 3  ;;  %v436_v17 = vshrl.u32 %v435_v16, 7  ;;  %s1502_s30 = scalar_lea.vmem [#allocation3], %s1404_s4 }
  0x3b   : > { %693 = vmatprep.subr.bf16.mxu0 %v1165_v42  ;;  %1085 = vmatprep.subr.bf16.mxu1 %v1165_v42  ;;  %s381_s29 = scalar_lea.vmem %s1653_s2, %s1663_s26  ;;  %s1080_s4 = sshll.u32 (%p1320_p6), %s1255_s14, 4 }
  0x3c   : > { %v437_v18 = vsub.s32 0, %v436_v17  ;;  %v433_v19 = vld [vmem:[%s381_s29] sm:$0x3]  ;;  %v441_v20 = vsub.s32 1, %v436_v17  ;;  %s1573_s7 = scalar_lea.vmem (%p1320_p6), %s1654_s3, %s1080_s4 }
  0x3e   : > { %694 = vmatpush1.bf16.msra.mxu0 %v1167_v43  ;;  %1101 = vmatpush1.bf16.msra.mxu1 %v1167_v43  ;;  %v1493_v21 = vrot.slane %v433_v19, %v437_v18  ;;  %v1495_v22 = vrot.slane %v433_v19, %v441_v20 }
  0x3f   : > { %695 = vmatprep.subr.bf16.mxu0 %v1168_v44  ;;  %1086 = vmatprep.subr.bf16.mxu1 %v1168_v44 }
  0x42   : > { %696 = vmatpush1.bf16.msra.mxu0 %v1170_v45  ;;  %1102 = vmatpush1.bf16.msra.mxu1 %v1170_v45 }
  0x43   : > { %697 = vmatprep.subr.bf16.mxu0 %v1171_v46  ;;  %1087 = vmatprep.subr.bf16.mxu1 %v1171_v46 }
  0x46   : > { %698 = vmatpush1.bf16.msra.mxu0 %v1173_v47  ;;  %1103 = vmatpush1.bf16.msra.mxu1 %v1173_v47 }
  0x47   : > { %699 = vmatprep.subr.bf16.mxu0 %v1174_v48  ;;  %1088 = vmatprep.subr.bf16.mxu1 %v1174_v48 }
  0x4a   : > { %700 = vmatpush1.bf16.msra.mxu0 %v1176_v49  ;;  %1104 = vmatpush1.bf16.msra.mxu1 %v1176_v49 }
  0x4b   : > { %701 = vmatprep.subr.bf16.mxu0 %v1177_v50  ;;  %1089 = vmatprep.subr.bf16.mxu1 %v1177_v50 }
  0x4e   : > { %702 = vmatpush1.bf16.msra.mxu0 %v1179_v51  ;;  %1105 = vmatpush1.bf16.msra.mxu1 %v1179_v51 }
  0x4f   : > { %703 = vmatprep.subr.bf16.mxu0 %v1180_v52  ;;  %1090 = vmatprep.subr.bf16.mxu1 %v1180_v52 }
  0x52   : > { %704 = vmatpush1.bf16.msra.mxu0 %v1182_v53  ;;  %1106 = vmatpush1.bf16.msra.mxu1 %v1182_v53 }
  0x53   : > { %705 = vmatprep.subr.bf16.mxu0 %v1183_v54  ;;  %1091 = vmatprep.subr.bf16.mxu1 %v1183_v54 }
  0x56   : > { %706 = vmatpush1.bf16.msra.mxu0 %v1185_v55  ;;  %1107 = vmatpush1.bf16.msra.mxu1 %v1185_v55 }
  0x57   : > { %707 = vmatprep.subr.bf16.mxu0 %v1186_v56  ;;  %1092 = vmatprep.subr.bf16.mxu1 %v1186_v56 }
  0x5a   : > { %708 = vmatpush1.bf16.msra.mxu0 %v1188_v57  ;;  %1108 = vmatpush1.bf16.msra.mxu1 %v1188_v57 }
  0x5b   : > { %709 = vmatprep.subr.bf16.mxu0 %v1189_v58  ;;  %1093 = vmatprep.subr.bf16.mxu1 %v1189_v58 }
  0x5e   : > { %710 = vmatpush1.bf16.msra.mxu0 %v1191_v59  ;;  %1109 = vmatpush1.bf16.msra.mxu1 %v1191_v59 }
  0x5f   : > { %711 = vmatprep.subr.bf16.mxu0 %v1192_v60  ;;  %1094 = vmatprep.subr.bf16.mxu1 %v1192_v60 }
  0x62   : > { %712 = vmatpush1.bf16.msra.mxu0 %v1194_v61  ;;  %1110 = vmatpush1.bf16.msra.mxu1 %v1194_v61 }
  0x63   : > { %713 = vmatprep.subr.bf16.mxu0 %v1195_v62  ;;  %1095 = vmatprep.subr.bf16.mxu1 %v1195_v62 }
  0x66   : > { %714 = vmatpush1.bf16.msra.mxu0 %v1197_v63  ;;  %1111 = vmatpush1.bf16.msra.mxu1 %v1197_v63 }
  0x67   : > { %715 = vmatprep.subr.bf16.mxu0 %v1198_v0  ;;  %1096 = vmatprep.subr.bf16.mxu1 %v1198_v0 }
  0x6a   : > { %716 = vmatpush1.bf16.msra.mxu0 %v1200_v1  ;;  %1112 = vmatpush1.bf16.msra.mxu1 %v1200_v1 }
  0x6d   : > { %718 = vmatmul.mubr.bf16.vlgmr.msra.gmra.mrb[0].mxu0 %v1201_v2  ;;  %758 = vmatmul.mubr.bf16.vlgmr.msra.gmra.mrb[0].mxu1 %v1204_v3 }
  0x6e   : > { %727 = vmatprep.mubr.bf16.mxu0 %v1207_v4  ;;  %767 = vmatprep.mubr.bf16.mxu1 %v1209_v5 }
  0x75   : > { %728 = vmatmul.mubr.bf16.gmra.mrb[4].mxu0 %v1211_v6  ;;  %768 = vmatmul.mubr.bf16.gmra.mrb[4].mxu1 %v1212_v7 }
  0x76   : > { %737 = vmatprep.mubr.bf16.mxu0 %v1213_v8  ;;  %777 = vmatprep.mubr.bf16.mxu1 %v1215_v9 }
  0x7d   : > { %738 = vmatmul.mubr.bf16.gmra.mrb[8].mxu0 %v1217_v10  ;;  %778 = vmatmul.mubr.bf16.gmra.mrb[8].mxu1 %v1218_v11 }
  0x7e   : > { %747 = vmatprep.mubr.bf16.mxu0 %v1219_v12  ;;  %787 = vmatprep.mubr.bf16.mxu1 %v1221_v13 }
  0x85   : > { %748 = vmatmul.mubr.bf16.gmra.mrb[12].mxu0 %v1223_v14  ;;  %788 = vmatmul.mubr.bf16.gmra.mrb[12].mxu1 %v1224_v15 }
 0x140   : > { %v719_v23 = vpop.f32.mrb[0].mxu0  ;;  %v759_v24 = vpop.f32.mrb[0].mxu1 }
 0x141   : > { %v720_v25 = vadd.f32 %v719_v23, %v1493_v21  ;;  %v760_v26 = vadd.f32 %v759_v24, %v1493_v21  ;;  %v721_v27 = vpop.f32.mrb[1].mxu0  ;;  %v761_v28 = vpop.f32.mrb[1].mxu1 }
 0x142   : > { %v722_v29 = vadd.f32 %v721_v27, %v1495_v22  ;;  %v762_v30 = vadd.f32 %v761_v28, %v1495_v22  ;;  %v723_v31 = vpop.f32.mrb[2].mxu0  ;;  %v763_v32 = vpop.f32.mrb[2].mxu1 }
 0x143   : > { %798 = vst [vmem:[%s1502_s30] sm:$0xff] %v720_v25  ;;  %814 = vst [vmem:[%s1502_s30 + $0x80] sm:$0xff] %v760_v26  ;;  %v724_v33 = vadd.f32 %v723_v31, %v1493_v21  ;;  %v764_v34 = vadd.f32 %v763_v32, %v1493_v21  ;;  %v725_v35 = vpop.f32.mrb[3].mxu0  ;;  %v765_v36 = vpop.f32.mrb[3].mxu1 }
 0x144   : > { %799 = vst [vmem:[%s1502_s30 + $0x8] sm:$0xff] %v722_v29  ;;  %815 = vst [vmem:[%s1502_s30 + $0x88] sm:$0xff] %v762_v30  ;;  %v726_v37 = vadd.f32 %v725_v35, %v1495_v22  ;;  %v766_v38 = vadd.f32 %v765_v36, %v1495_v22 }
 0x145   : > { %800 = vst [vmem:[%s1502_s30 + $0x10] sm:$0xff] %v724_v33  ;;  %816 = vst [vmem:[%s1502_s30 + $0x90] sm:$0xff] %v764_v34 }
 0x146   : > { %801 = vst [vmem:[%s1502_s30 + $0x18] sm:$0xff] %v726_v37  ;;  %817 = vst [vmem:[%s1502_s30 + $0x98] sm:$0xff] %v766_v38 }
 0x148   : > { %v729_v39 = vpop.f32.mrb[4].mxu0  ;;  %v769_v40 = vpop.f32.mrb[4].mxu1 }
 0x149   : > { %v730_v41 = vadd.f32 %v729_v39, %v1493_v21  ;;  %v770_v42 = vadd.f32 %v769_v40, %v1493_v21  ;;  %v731_v43 = vpop.f32.mrb[5].mxu0  ;;  %v771_v44 = vpop.f32.mrb[5].mxu1 }
 0x14a   : > { %v732_v45 = vadd.f32 %v731_v43, %v1495_v22  ;;  %v772_v46 = vadd.f32 %v771_v44, %v1495_v22  ;;  %v733_v47 = vpop.f32.mrb[6].mxu0  ;;  %v773_v48 = vpop.f32.mrb[6].mxu1  ;;  %v887_v39 = vld [vmem:[%s1502_s30 + $0x80] sm:$0xff] (%p1320_p6) }
 0x14b   : > { %802 = vst [vmem:[%s1502_s30 + $0x20] sm:$0xff] %v730_v41  ;;  %818 = vst [vmem:[%s1502_s30 + $0xa0] sm:$0xff] %v770_v42  ;;  %v734_v49 = vadd.f32 %v733_v47, %v1493_v21  ;;  %v774_v50 = vadd.f32 %v773_v48, %v1493_v21  ;;  %v735_v51 = vpop.f32.mrb[7].mxu0  ;;  %v775_v52 = vpop.f32.mrb[7].mxu1  ;;  %v889_v40 = vld [vmem:[%s1502_s30 + $0x88] sm:$0xff] (%p1320_p6) }
 0x14c   : > { %803 = vst [vmem:[%s1502_s30 + $0x28] sm:$0xff] %v732_v45  ;;  %819 = vst [vmem:[%s1502_s30 + $0xa8] sm:$0xff] %v772_v46  ;;  %v736_v53 = vadd.f32 %v735_v51, %v1495_v22  ;;  %v776_v54 = vadd.f32 %v775_v52, %v1495_v22  ;;  %v859_v25 = vld [vmem:[%s1502_s30 + $0x10] sm:$0xff] (%p1320_p6) }
 0x14d   : > { %804 = vst [vmem:[%s1502_s30 + $0x30] sm:$0xff] %v734_v49  ;;  %820 = vst [vmem:[%s1502_s30 + $0xb0] sm:$0xff] %v774_v50  ;;  %v861_v26 = vld [vmem:[%s1502_s30 + $0x18] sm:$0xff] (%p1320_p6)  ;;  %v891_v41 = vld [vmem:[%s1502_s30 + $0x90] sm:$0xff] (%p1320_p6) }
 0x14e   : > { %805 = vst [vmem:[%s1502_s30 + $0x38] sm:$0xff] %v736_v53  ;;  %821 = vst [vmem:[%s1502_s30 + $0xb8] sm:$0xff] %v776_v54  ;;  %v893_v42 = vld [vmem:[%s1502_s30 + $0x98] sm:$0xff] (%p1320_p6) }
 0x14f   : > { %860 = vst [vmem:[%s1573_s7 + $0x20] sm:$0xff] (%p1320_p6), %v859_v25  ;;  %862 = vst [vmem:[%s1573_s7 + $0x28] sm:$0xff] (%p1320_p6), %v861_v26 }
 0x150   : > { %v739_v55 = vpop.f32.mrb[8].mxu0  ;;  %v779_v56 = vpop.f32.mrb[8].mxu1  ;;  %888 = vst [vmem:[%s1573_s7 + $0x100] sm:$0xff] (%p1320_p6), %v887_v39  ;;  %890 = vst [vmem:[%s1573_s7 + $0x108] sm:$0xff] (%p1320_p6), %v889_v40 }
 0x151   : > { %v740_v57 = vadd.f32 %v739_v55, %v1493_v21  ;;  %v780_v58 = vadd.f32 %v779_v56, %v1493_v21  ;;  %v741_v59 = vpop.f32.mrb[9].mxu0  ;;  %v781_v60 = vpop.f32.mrb[9].mxu1  ;;  %892 = vst [vmem:[%s1573_s7 + $0x120] sm:$0xff] (%p1320_p6), %v891_v41  ;;  %894 = vst [vmem:[%s1573_s7 + $0x128] sm:$0xff] (%p1320_p6), %v893_v42 }
 0x152   : > { %v742_v61 = vadd.f32 %v741_v59, %v1495_v22  ;;  %v782_v62 = vadd.f32 %v781_v60, %v1495_v22  ;;  %v743_v63 = vpop.f32.mrb[10].mxu0  ;;  %v783_v0 = vpop.f32.mrb[10].mxu1  ;;  %v863_v27 = vld [vmem:[%s1502_s30 + $0x20] sm:$0xff] (%p1320_p6) }
 0x153   : > { %806 = vst [vmem:[%s1502_s30 + $0x40] sm:$0xff] %v740_v57  ;;  %822 = vst [vmem:[%s1502_s30 + $0xc0] sm:$0xff] %v780_v58  ;;  %v744_v1 = vadd.f32 %v743_v63, %v1493_v21  ;;  %v784_v2 = vadd.f32 %v783_v0, %v1493_v21  ;;  %v745_v3 = vpop.f32.mrb[11].mxu0  ;;  %v785_v4 = vpop.f32.mrb[11].mxu1  ;;  %v865_v28 = vld [vmem:[%s1502_s30 + $0x28] sm:$0xff] (%p1320_p6)  ;;  %v895_v43 = vld [vmem:[%s1502_s30 + $0xa0] sm:$0xff] (%p1320_p6) }
 0x154   : > { %807 = vst [vmem:[%s1502_s30 + $0x48] sm:$0xff] %v742_v61  ;;  %823 = vst [vmem:[%s1502_s30 + $0xc8] sm:$0xff] %v782_v62  ;;  %v746_v5 = vadd.f32 %v745_v3, %v1495_v22  ;;  %v786_v6 = vadd.f32 %v785_v4, %v1495_v22  ;;  %v867_v29 = vld [vmem:[%s1502_s30 + $0x30] sm:$0xff] (%p1320_p6)  ;;  %v897_v44 = vld [vmem:[%s1502_s30 + $0xa8] sm:$0xff] (%p1320_p6) }
 0x155   : > { %808 = vst [vmem:[%s1502_s30 + $0x50] sm:$0xff] %v744_v1  ;;  %824 = vst [vmem:[%s1502_s30 + $0xd0] sm:$0xff] %v784_v2  ;;  %v869_v30 = vld [vmem:[%s1502_s30 + $0x38] sm:$0xff] (%p1320_p6)  ;;  %v899_v45 = vld [vmem:[%s1502_s30 + $0xb0] sm:$0xff] (%p1320_p6) }
 0x156   : > { %809 = vst [vmem:[%s1502_s30 + $0x58] sm:$0xff] %v746_v5  ;;  %825 = vst [vmem:[%s1502_s30 + $0xd8] sm:$0xff] %v786_v6  ;;  %v901_v46 = vld [vmem:[%s1502_s30 + $0xb8] sm:$0xff] (%p1320_p6) }
 0x157   : > { %864 = vst [vmem:[%s1573_s7 + $0x40] sm:$0xff] (%p1320_p6), %v863_v27  ;;  %866 = vst [vmem:[%s1573_s7 + $0x48] sm:$0xff] (%p1320_p6), %v865_v28 }
 0x158   : > { %v749_v7 = vpop.f32.mrb[12].mxu0  ;;  %v789_v8 = vpop.f32.mrb[12].mxu1  ;;  %836 = sbr.rel (!%p1320_p6) target bundleno = 360 (0x168), region = 74  ;;  %868 = vst [vmem:[%s1573_s7 + $0x60] sm:$0xff] (%p1320_p6), %v867_v29  ;;  %870 = vst [vmem:[%s1573_s7 + $0x68] sm:$0xff] (%p1320_p6), %v869_v30 }
 0x159   : > { %v750_v9 = vadd.f32 %v749_v7, %v1493_v21  ;;  %v790_v10 = vadd.f32 %v789_v8, %v1493_v21  ;;  %v751_v11 = vpop.f32.mrb[13].mxu0  ;;  %v791_v12 = vpop.f32.mrb[13].mxu1  ;;  %896 = vst [vmem:[%s1573_s7 + $0x140] sm:$0xff] (%p1320_p6), %v895_v43  ;;  %898 = vst [vmem:[%s1573_s7 + $0x148] sm:$0xff] (%p1320_p6), %v897_v44 }
 0x15a   : > { %v752_v13 = vadd.f32 %v751_v11, %v1495_v22  ;;  %v792_v14 = vadd.f32 %v791_v12, %v1495_v22  ;;  %v753_v15 = vpop.f32.mrb[14].mxu0  ;;  %v793_v16 = vpop.f32.mrb[14].mxu1  ;;  %v871_v31 = vld [vmem:[%s1502_s30 + $0x40] sm:$0xff] (%p1320_p6)  ;;  %900 = vst [vmem:[%s1573_s7 + $0x160] sm:$0xff] (%p1320_p6), %v899_v45  ;;  %902 = vst [vmem:[%s1573_s7 + $0x168] sm:$0xff] (%p1320_p6), %v901_v46 }
 0x15b   : > { %810 = vst [vmem:[%s1502_s30 + $0x60] sm:$0xff] %v750_v9  ;;  %826 = vst [vmem:[%s1502_s30 + $0xe0] sm:$0xff] %v790_v10  ;;  %v754_v17 = vadd.f32 %v753_v15, %v1493_v21  ;;  %v794_v18 = vadd.f32 %v793_v16, %v1493_v21  ;;  %v755_v19 = vpop.f32.mrb[15].mxu0  ;;  %v795_v20 = vpop.f32.mrb[15].mxu1  ;;  %v855_v21 = vld [vmem:[%s1502_s30] sm:$0xff] (%p1320_p6)  ;;  %v873_v32 = vld [vmem:[%s1502_s30 + $0x48] sm:$0xff] (%p1320_p6) }
 0x15c   : > { %811 = vst [vmem:[%s1502_s30 + $0x68] sm:$0xff] %v752_v13  ;;  %827 = vst [vmem:[%s1502_s30 + $0xe8] sm:$0xff] %v792_v14  ;;  %v756_v23 = vadd.f32 %v755_v19, %v1495_v22  ;;  %v796_v24 = vadd.f32 %v795_v20, %v1495_v22  ;;  %v857_v22 = vld [vmem:[%s1502_s30 + $0x8] sm:$0xff] (%p1320_p6)  ;;  %v875_v33 = vld [vmem:[%s1502_s30 + $0x50] sm:$0xff] (%p1320_p6) }
 0x15d   : > { %812 = vst [vmem:[%s1502_s30 + $0x70] sm:$0xff] %v754_v17  ;;  %828 = vst [vmem:[%s1502_s30 + $0xf0] sm:$0xff] %v794_v18  ;;  %v877_v34 = vld [vmem:[%s1502_s30 + $0x58] sm:$0xff] (%p1320_p6)  ;;  %v903_v47 = vld [vmem:[%s1502_s30 + $0xc0] sm:$0xff] (%p1320_p6) }
 0x15e   : > { %813 = vst [vmem:[%s1502_s30 + $0x78] sm:$0xff] %v756_v23  ;;  %829 = vst [vmem:[%s1502_s30 + $0xf8] sm:$0xff] %v796_v24  ;;  %v905_v48 = vld [vmem:[%s1502_s30 + $0xc8] sm:$0xff] (%p1320_p6)  ;;  %v907_v49 = vld [vmem:[%s1502_s30 + $0xd0] sm:$0xff] (%p1320_p6) }
 0x15f   : > { %856 = vst [vmem:[%s1573_s7] sm:$0xff] %v855_v21  ;;  %858 = vst [vmem:[%s1573_s7 + $0x8] sm:$0xff] %v857_v22  ;;  %v909_v50 = vld [vmem:[%s1502_s30 + $0xd8] sm:$0xff] }
 0x160   : > { %872 = vst [vmem:[%s1573_s7 + $0x80] sm:$0xff] %v871_v31  ;;  %874 = vst [vmem:[%s1573_s7 + $0x88] sm:$0xff] %v873_v32 }
 0x161   : > { %876 = vst [vmem:[%s1573_s7 + $0xa0] sm:$0xff] %v875_v33  ;;  %878 = vst [vmem:[%s1573_s7 + $0xa8] sm:$0xff] %v877_v34 }
 0x162   : > { %v879_v35 = vld [vmem:[%s1502_s30 + $0x60] sm:$0xff]  ;;  %904 = vst [vmem:[%s1573_s7 + $0x180] sm:$0xff] %v903_v47  ;;  %906 = vst [vmem:[%s1573_s7 + $0x188] sm:$0xff] %v905_v48 }
 0x163   : > { %v881_v36 = vld [vmem:[%s1502_s30 + $0x68] sm:$0xff]  ;;  %880 = vst [vmem:[%s1573_s7 + $0xc0] sm:$0xff] %v879_v35  ;;  %908 = vst [vmem:[%s1573_s7 + $0x1a0] sm:$0xff] %v907_v49  ;;  %v911_v51 = vld [vmem:[%s1502_s30 + $0xe0] sm:$0xff] }
 0x164   : > { %v883_v37 = vld [vmem:[%s1502_s30 + $0x70] sm:$0xff]  ;;  %882 = vst [vmem:[%s1573_s7 + $0xc8] sm:$0xff] %v881_v36  ;;  %v913_v52 = vld [vmem:[%s1502_s30 + $0xe8] sm:$0xff]  ;;  %910 = vst [vmem:[%s1573_s7 + $0x1a8] sm:$0xff] %v909_v50 }
 0x165   : > { %884 = vst [vmem:[%s1573_s7 + $0xe0] sm:$0xff] %v883_v37  ;;  %v885_v38 = vld [vmem:[%s1502_s30 + $0x78] sm:$0xff]  ;;  %912 = vst [vmem:[%s1573_s7 + $0x1c0] sm:$0xff] %v911_v51  ;;  %v915_v53 = vld [vmem:[%s1502_s30 + $0xf0] sm:$0xff] }
 0x166   : > { %886 = vst [vmem:[%s1573_s7 + $0xe8] sm:$0xff] %v885_v38  ;;  %914 = vst [vmem:[%s1573_s7 + $0x1c8] sm:$0xff] %v913_v52  ;;  %v917_v54 = vld [vmem:[%s1502_s30 + $0xf8] sm:$0xff] }
 0x167   : > { %916 = vst [vmem:[%s1573_s7 + $0x1e0] sm:$0xff] %v915_v53  ;;  %918 = vst [vmem:[%s1573_s7 + $0x1e8] sm:$0xff] %v917_v54 }
 0x168 PF: > { %s13_s16 = sadd.s32 1, %s1263_s16   ;;  %s1656_s12 = smov %s1251_s13 }
 0x169   : > { %p10_p12 = scmp.ge.s32.totalorder %s13_s16, 4   ;;  %s1657_s13 = smov %s1325_s22 }
 0x16a   : > { %s1658_s14 = smov %s1259_s15  ;;  %s1659_s15 = smov %s1661_s17 }
 0x16b   :  { %12 = sbr.rel (!%p10_p12) target bundleno = 3 (0x3), region = 134 }

</bundles_post_ra>
